<compile_context>
chip_gen: v7x
topology: tpu7x:2x2x1
jax: 0.10.0
libtpu: 0.0.40
codegen_flags: <defaults>
</compile_context>

<pallas_src>
import jax
import jax.numpy as jnp
from jax.experimental import pallas as pl
from jax.experimental.pallas import tpu as pltpu

NEG_SLOPE = 0.01  # nn.LeakyReLU default


def _leaky_relu(x):
    return jnp.where(x > 0, x, NEG_SLOPE * x)


def mtx_kernel(x_ref, w1_ref, b1_ref, w2_ref, b2_ref,
               wh1_ref, bh1_ref, wh2_ref, bh2_ref,
               o1_ref, o2_ref):
    # Whole forward pass fused per batch tile. MXU operands use the weight dtype
    # (f32 or bf16, cast in-kernel); accumulation / bias add / LeakyReLU stay f32.
    cd = w1_ref.dtype

    x = x_ref[...].astype(cd)
    h = jnp.dot(x, w1_ref[...], preferred_element_type=jnp.float32) + b1_ref[...]
    h = _leaky_relu(h)

    h = h.astype(cd)
    h = jnp.dot(h, w2_ref[...], preferred_element_type=jnp.float32) + b2_ref[...]
    h = _leaky_relu(h)

    h = h.astype(cd)
    v1 = jnp.dot(h, wh1_ref[...], preferred_element_type=jnp.float32) + bh1_ref[...]
    v2 = jnp.dot(h, wh2_ref[...], preferred_element_type=jnp.float32) + bh2_ref[...]
    o1_ref[...] = v1.astype(o1_ref.dtype)
    o2_ref[...] = v2.astype(o2_ref.dtype)


def _round_up(x, m):
    return ((x + m - 1) // m) * m


def _choose_tile_b(B, max_tile=4096):
    """Big tiles (amortize per-step overhead) with an EVEN step count for v7x's 2 TCs."""
    if B <= 16:
        # Single full-array block (legal: block dim equals the array dim).
        return B
    steps = max(2, 2 * pl.cdiv(pl.cdiv(B, 2), max_tile))  # even number of ~equal steps
    return max(8, _round_up(pl.cdiv(B, steps), 8))


def multi_task_explainer(x, params, *, tile_b=None, compute_dtype=None, out_dtype=None):
    """x: [B, num_features] float32. params: dict of weights ([in,out]) / biases ([1,out]).

    compute_dtype: dtype of MXU operands (e.g. jnp.bfloat16); accumulation stays f32.
    out_dtype: dtype of the stored outputs (default x.dtype).
    Note: in a jit'd caller with constant params the dtype casts below fold away;
    hoist them to init if params change per call.
    """
    B, F = x.shape
    L = params["w1"].shape[1]
    head_out = params["wh1"].shape[1]  # 2 * num_features

    cd = jnp.dtype(compute_dtype) if compute_dtype is not None else jnp.dtype(x.dtype)
    od = jnp.dtype(out_dtype) if out_dtype is not None else jnp.dtype(x.dtype)

    w1 = params["w1"].astype(cd)
    w2 = params["w2"].astype(cd)
    wh1 = params["wh1"].astype(cd)
    wh2 = params["wh2"].astype(cd)
    b1 = params["b1"].astype(jnp.float32)
    b2 = params["b2"].astype(jnp.float32)
    bh1 = params["bh1"].astype(jnp.float32)
    bh2 = params["bh2"].astype(jnp.float32)

    if tile_b is None:
        tile_b = _choose_tile_b(B)
    grid = (pl.cdiv(B, tile_b),)

    # Batch-tiled input/outputs; weights/biases are resident whole-array VMEM constants.
    x_spec = pl.BlockSpec((tile_b, F), lambda i: (i, 0))
    o_spec = pl.BlockSpec((tile_b, head_out), lambda i: (i, 0))
    const_spec = pl.BlockSpec(memory_space=pltpu.MemorySpace.VMEM)

    # Scoped-VMEM budget: double-buffered x + two output tiles, f32-padded to 128 lanes,
    # plus intermediates / params headroom. Clamped to [16 MiB, 48 MiB] (safe on v5e-v7x).
    row_bytes = 128 * 4
    tile_bytes = tile_b * row_bytes
    vmem_est = 2 * tile_bytes + 2 * (2 * tile_bytes) + 4 * tile_bytes + (1 << 20)
    vmem_limit = int(min(48 << 20, max(16 << 20, vmem_est)))

    flops = 2 * B * (F * L + L * L + 2 * L * head_out)
    param_bytes = sum(int(a.size) * a.dtype.itemsize
                      for a in (w1, b1, w2, b2, wh1, bh1, wh2, bh2))
    bytes_accessed = (int(x.size) * jnp.dtype(x.dtype).itemsize
                      + param_bytes
                      + 2 * B * head_out * od.itemsize)

    fn = pl.pallas_call(
        mtx_kernel,
        grid=grid,
        in_specs=[x_spec,
                  const_spec, const_spec,   # w1, b1
                  const_spec, const_spec,   # w2, b2
                  const_spec, const_spec,   # wh1, bh1
                  const_spec, const_spec],  # wh2, bh2
        out_specs=[o_spec, o_spec],
        out_shape=(jax.ShapeDtypeStruct((B, head_out), od),
                   jax.ShapeDtypeStruct((B, head_out), od)),
        compiler_params=pltpu.CompilerParams(
            dimension_semantics=("parallel",),
            vmem_limit_bytes=vmem_limit),
        cost_estimate=pl.CostEstimate(
            flops=flops, transcendentals=0, bytes_accessed=bytes_accessed),
    )
    return fn(x, w1, b1, w2, b2, wh1, bh1, wh2, bh2)


def init_params(key, num_features, layer_size):
    """Deterministic synthetic parameters (shapes match the nn.Module __init__)."""
    ks = jax.random.split(key, 8)

    def lin(kw, kb, fan_in, fan_out):
        bound = 1.0 / jnp.sqrt(fan_in)
        w = jax.random.uniform(kw, (fan_in, fan_out), jnp.float32, -bound, bound)
        b = jax.random.uniform(kb, (1, fan_out), jnp.float32, -bound, bound)
        return w, b

    w1, b1 = lin(ks[0], ks[1], num_features, layer_size)
    w2, b2 = lin(ks[2], ks[3], layer_size, layer_size)
    wh1, bh1 = lin(ks[4], ks[5], layer_size, 2 * num_features)
    wh2, bh2 = lin(ks[6], ks[7], layer_size, 2 * num_features)
    return dict(w1=w1, b1=b1, w2=w2, b2=b2, wh1=wh1, bh1=bh1, wh2=wh2, bh2=bh2)


def reference(x, p):
    h = _leaky_relu(x @ p["w1"] + p["b1"])
    h = _leaky_relu(h @ p["w2"] + p["b2"])
    return h @ p["wh1"] + p["bh1"], h @ p["wh2"] + p["bh2"]


if __name__ == "__main__":
    num_features = 32
    layer_size = 64

    key = jax.random.PRNGKey(0)
    kx, kp = jax.random.split(key)
    params = init_params(kp, num_features, layer_size)

    # Small, tile-aligned batch: single-step grid, exact f32 path.
    x8 = jax.random.normal(kx, (8, num_features), jnp.float32)
    r1, r2 = reference(x8, params)
    v1, v2 = multi_task_explainer(x8, params)
    jax.block_until_ready((v1, v2))
    assert v1.shape == (8, 2 * num_features) and v2.shape == (8, 2 * num_features)
    assert jnp.allclose(v1, r1, atol=1e-5, rtol=1e-5)
    assert jnp.allclose(v2, r2, atol=1e-5, rtol=1e-5)

    # Non-divisible batch: exercises the cdiv grid (even 2-step) + masked partial edge block.
    x20 = jax.random.normal(kx, (20, num_features), jnp.float32)
    r1, r2 = reference(x20, params)
    v1, v2 = multi_task_explainer(x20, params)
    jax.block_until_ready((v1, v2))
    assert v1.shape == (20, 2 * num_features) and v2.shape == (20, 2 * num_features)
    assert jnp.allclose(v1, r1, atol=1e-5, rtol=1e-5)
    assert jnp.allclose(v2, r2, atol=1e-5, rtol=1e-5)

    # bf16 MXU operands + bf16 outputs (f32 accumulation) — looser tolerance due to
    # operand/activation/output rounding.
    r1, r2 = reference(x8, params)
    q1, q2 = multi_task_explainer(x8, params,
                                  compute_dtype=jnp.bfloat16, out_dtype=jnp.bfloat16)
    jax.block_until_ready((q1, q2))
    assert q1.dtype == jnp.bfloat16 and q2.dtype == jnp.bfloat16
    assert jnp.allclose(q1.astype(jnp.float32), r1, atol=5e-2, rtol=5e-2)
    assert jnp.allclose(q2.astype(jnp.float32), r2, atol=5e-2, rtol=5e-2)

    print("KERNEL_OK")
</pallas_src>

<mosaic_0001>
module attributes {stable_mosaic.version = 11 : i64} {
  func.func @mtx_kernel(%arg0: i32, %arg1: memref<8x32xf32, #tpu.memory_space<vmem>>, %arg2: memref<32x64xf32, #tpu.memory_space<vmem>>, %arg3: memref<1x64xf32, #tpu.memory_space<vmem>>, %arg4: memref<64x64xf32, #tpu.memory_space<vmem>>, %arg5: memref<1x64xf32, #tpu.memory_space<vmem>>, %arg6: memref<64x64xf32, #tpu.memory_space<vmem>>, %arg7: memref<1x64xf32, #tpu.memory_space<vmem>>, %arg8: memref<64x64xf32, #tpu.memory_space<vmem>>, %arg9: memref<1x64xf32, #tpu.memory_space<vmem>>, %arg10: memref<8x64xf32, #tpu.memory_space<vmem>>, %arg11: memref<8x64xf32, #tpu.memory_space<vmem>>) attributes {dimension_semantics = [#tpu.dimension_semantics<parallel>], iteration_bounds = array<i64: 1>, scalar_prefetch = 0 : i64, scratch_operands = 0 : i64, tpu.core_type = #tpu.core_type<tc>, window_params = [{transform_indices = @transform_0, window_bounds = array<i64: 8, 32>}, {pipeline_mode = #tpu.pipeline_mode<synchronous>, transform_indices = @transform_1, window_bounds = array<i64: 32, 64>}, {pipeline_mode = #tpu.pipeline_mode<synchronous>, transform_indices = @transform_2, window_bounds = array<i64: 1, 64>}, {pipeline_mode = #tpu.pipeline_mode<synchronous>, transform_indices = @transform_3, window_bounds = array<i64: 64, 64>}, {pipeline_mode = #tpu.pipeline_mode<synchronous>, transform_indices = @transform_4, window_bounds = array<i64: 1, 64>}, {pipeline_mode = #tpu.pipeline_mode<synchronous>, transform_indices = @transform_5, window_bounds = array<i64: 64, 64>}, {pipeline_mode = #tpu.pipeline_mode<synchronous>, transform_indices = @transform_6, window_bounds = array<i64: 1, 64>}, {pipeline_mode = #tpu.pipeline_mode<synchronous>, transform_indices = @transform_7, window_bounds = array<i64: 64, 64>}, {pipeline_mode = #tpu.pipeline_mode<synchronous>, transform_indices = @transform_8, window_bounds = array<i64: 1, 64>}, {transform_indices = @transform_9, window_bounds = array<i64: 8, 64>}, {transform_indices = @transform_10, window_bounds = array<i64: 8, 64>}]} {
    %c0 = arith.constant 0 : index
    %c0_0 = arith.constant 0 : index
    %0 = vector.load %arg1[%c0, %c0_0] : memref<8x32xf32, #tpu.memory_space<vmem>>, vector<8x32xf32>
    %c0_1 = arith.constant 0 : index
    %c0_2 = arith.constant 0 : index
    %1 = vector.load %arg2[%c0_1, %c0_2] : memref<32x64xf32, #tpu.memory_space<vmem>>, vector<32x64xf32>
    %cst = arith.constant dense<0.000000e+00> : vector<8x64xf32>
    %2 = tpu.matmul %0, %1, %cst {dimension_numbers = #tpu.dot_dimension_numbers<[1], [0], [0], [1], [0, 0, 1, 1], [], []>} : vector<8x32xf32>, vector<32x64xf32>, vector<8x64xf32> -> vector<8x64xf32>
    %c0_3 = arith.constant 0 : index
    %c0_4 = arith.constant 0 : index
    %3 = vector.load %arg3[%c0_3, %c0_4] : memref<1x64xf32, #tpu.memory_space<vmem>>, vector<1x64xf32>
    %4 = vector.broadcast %3 : vector<1x64xf32> to vector<8x64xf32>
    %5 = arith.addf %2, %4 : vector<8x64xf32>
    %cst_5 = arith.constant 0.000000e+00 : f32
    %6 = vector.broadcast %cst_5 : f32 to vector<8x64xf32>
    %7 = arith.cmpf ogt, %5, %6 : vector<8x64xf32>
    %cst_6 = arith.constant 0.00999999977 : f32
    %8 = vector.broadcast %cst_6 : f32 to vector<8x64xf32>
    %9 = arith.mulf %8, %5 : vector<8x64xf32>
    %10 = arith.select %7, %5, %9 : vector<8x64xi1>, vector<8x64xf32>
    %c0_7 = arith.constant 0 : index
    %c0_8 = arith.constant 0 : index
    %11 = vector.load %arg4[%c0_7, %c0_8] : memref<64x64xf32, #tpu.memory_space<vmem>>, vector<64x64xf32>
    %cst_9 = arith.constant dense<0.000000e+00> : vector<8x64xf32>
    %12 = tpu.matmul %10, %11, %cst_9 {dimension_numbers = #tpu.dot_dimension_numbers<[1], [0], [0], [1], [0, 0, 1, 1], [], []>} : vector<8x64xf32>, vector<64x64xf32>, vector<8x64xf32> -> vector<8x64xf32>
    %c0_10 = arith.constant 0 : index
    %c0_11 = arith.constant 0 : index
    %13 = vector.load %arg5[%c0_10, %c0_11] : memref<1x64xf32, #tpu.memory_space<vmem>>, vector<1x64xf32>
    %14 = vector.broadcast %13 : vector<1x64xf32> to vector<8x64xf32>
    %15 = arith.addf %12, %14 : vector<8x64xf32>
    %cst_12 = arith.constant 0.000000e+00 : f32
    %16 = vector.broadcast %cst_12 : f32 to vector<8x64xf32>
    %17 = arith.cmpf ogt, %15, %16 : vector<8x64xf32>
    %cst_13 = arith.constant 0.00999999977 : f32
    %18 = vector.broadcast %cst_13 : f32 to vector<8x64xf32>
    %19 = arith.mulf %18, %15 : vector<8x64xf32>
    %20 = arith.select %17, %15, %19 : vector<8x64xi1>, vector<8x64xf32>
    %c0_14 = arith.constant 0 : index
    %c0_15 = arith.constant 0 : index
    %21 = vector.load %arg6[%c0_14, %c0_15] : memref<64x64xf32, #tpu.memory_space<vmem>>, vector<64x64xf32>
    %cst_16 = arith.constant dense<0.000000e+00> : vector<8x64xf32>
    %22 = tpu.matmul %20, %21, %cst_16 {dimension_numbers = #tpu.dot_dimension_numbers<[1], [0], [0], [1], [0, 0, 1, 1], [], []>} : vector<8x64xf32>, vector<64x64xf32>, vector<8x64xf32> -> vector<8x64xf32>
    %c0_17 = arith.constant 0 : index
    %c0_18 = arith.constant 0 : index
    %23 = vector.load %arg7[%c0_17, %c0_18] : memref<1x64xf32, #tpu.memory_space<vmem>>, vector<1x64xf32>
    %24 = vector.broadcast %23 : vector<1x64xf32> to vector<8x64xf32>
    %25 = arith.addf %22, %24 : vector<8x64xf32>
    %c0_19 = arith.constant 0 : index
    %c0_20 = arith.constant 0 : index
    %26 = vector.load %arg8[%c0_19, %c0_20] : memref<64x64xf32, #tpu.memory_space<vmem>>, vector<64x64xf32>
    %cst_21 = arith.constant dense<0.000000e+00> : vector<8x64xf32>
    %27 = tpu.matmul %20, %26, %cst_21 {dimension_numbers = #tpu.dot_dimension_numbers<[1], [0], [0], [1], [0, 0, 1, 1], [], []>} : vector<8x64xf32>, vector<64x64xf32>, vector<8x64xf32> -> vector<8x64xf32>
    %c0_22 = arith.constant 0 : index
    %c0_23 = arith.constant 0 : index
    %28 = vector.load %arg9[%c0_22, %c0_23] : memref<1x64xf32, #tpu.memory_space<vmem>>, vector<1x64xf32>
    %29 = vector.broadcast %28 : vector<1x64xf32> to vector<8x64xf32>
    %30 = arith.addf %27, %29 : vector<8x64xf32>
    %c0_24 = arith.constant 0 : index
    %c0_25 = arith.constant 0 : index
    %31 = vector.load %arg10[%c0_24, %c0_25] : memref<8x64xf32, #tpu.memory_space<vmem>>, vector<8x64xf32>
    tpu.vector_store %arg10[%c0_24, %c0_25], %25 {strides = array<i32>} : memref<8x64xf32, #tpu.memory_space<vmem>>, vector<8x64xf32>,
    %c0_26 = arith.constant 0 : index
    %c0_27 = arith.constant 0 : index
    %32 = vector.load %arg11[%c0_26, %c0_27] : memref<8x64xf32, #tpu.memory_space<vmem>>, vector<8x64xf32>
    tpu.vector_store %arg11[%c0_26, %c0_27], %30 {strides = array<i32>} : memref<8x64xf32, #tpu.memory_space<vmem>>, vector<8x64xf32>,
    return
  }
  func.func @transform_0(%arg0: i32) -> (i32, i32) {
    %c0_i32 = arith.constant 0 : i32
    %c0_i32_0 = arith.constant 0 : i32
    return %arg0, %c0_i32 : i32, i32
  }
  func.func @transform_1(%arg0: i32) -> (i32, i32) {
    %c0_i32 = arith.constant 0 : i32
    %c0_i32_0 = arith.constant 0 : i32
    %c0_i32_1 = arith.constant 0 : i32
    return %c0_i32, %c0_i32_0 : i32, i32
  }
  func.func @transform_2(%arg0: i32) -> (i32, i32) {
    %c0_i32 = arith.constant 0 : i32
    %c0_i32_0 = arith.constant 0 : i32
    %c0_i32_1 = arith.constant 0 : i32
    return %c0_i32, %c0_i32_0 : i32, i32
  }
  func.func @transform_3(%arg0: i32) -> (i32, i32) {
    %c0_i32 = arith.constant 0 : i32
    %c0_i32_0 = arith.constant 0 : i32
    %c0_i32_1 = arith.constant 0 : i32
    return %c0_i32, %c0_i32_0 : i32, i32
  }
  func.func @transform_4(%arg0: i32) -> (i32, i32) {
    %c0_i32 = arith.constant 0 : i32
    %c0_i32_0 = arith.constant 0 : i32
    %c0_i32_1 = arith.constant 0 : i32
    return %c0_i32, %c0_i32_0 : i32, i32
  }
  func.func @transform_5(%arg0: i32) -> (i32, i32) {
    %c0_i32 = arith.constant 0 : i32
    %c0_i32_0 = arith.constant 0 : i32
    %c0_i32_1 = arith.constant 0 : i32
    return %c0_i32, %c0_i32_0 : i32, i32
  }
  func.func @transform_6(%arg0: i32) -> (i32, i32) {
    %c0_i32 = arith.constant 0 : i32
    %c0_i32_0 = arith.constant 0 : i32
    %c0_i32_1 = arith.constant 0 : i32
    return %c0_i32, %c0_i32_0 : i32, i32
  }
  func.func @transform_7(%arg0: i32) -> (i32, i32) {
    %c0_i32 = arith.constant 0 : i32
    %c0_i32_0 = arith.constant 0 : i32
    %c0_i32_1 = arith.constant 0 : i32
    return %c0_i32, %c0_i32_0 : i32, i32
  }
  func.func @transform_8(%arg0: i32) -> (i32, i32) {
    %c0_i32 = arith.constant 0 : i32
    %c0_i32_0 = arith.constant 0 : i32
    %c0_i32_1 = arith.constant 0 : i32
    return %c0_i32, %c0_i32_0 : i32, i32
  }
  func.func @transform_9(%arg0: i32) -> (i32, i32) {
    %c0_i32 = arith.constant 0 : i32
    %c0_i32_0 = arith.constant 0 : i32
    return %arg0, %c0_i32 : i32, i32
  }
  func.func @transform_10(%arg0: i32) -> (i32, i32) {
    %c0_i32 = arith.constant 0 : i32
    %c0_i32_0 = arith.constant 0 : i32
    return %arg0, %c0_i32 : i32, i32
  }
}

</mosaic_0001>

<bundles_post_ra>
// kernel: tpu_custom_call.1
= control target key start
LH: loop header
LB: loop body
LE: loop exit
PB: predicated region body
PF: predicated region fallthrough
CT: control target
= control target key end

     0   :  { %16 = vsyncpa [#allocation3], 0  ;;  %s1017_s0 = inlined_call_operand.hbm [shape: f32[8,32], index: 0, kind: input, shape index: {}]   ;;  %s1018_s1 = inlined_call_operand.hbm [shape: f32[32,64], index: 1, kind: input, shape index: {}]   ;;  %s1019_s2 = inlined_call_operand.vmem [shape: f32[1,64], index: 2, kind: input, shape index: {}]   ;;  %s1020_s3 = inlined_call_operand.hbm [shape: f32[64,64], index: 3, kind: input, shape index: {}]   ;;  %s1021_s4 = inlined_call_operand.vmem [shape: f32[1,64], index: 4, kind: input, shape index: {}]   ;;  %s1022_s5 = inlined_call_operand.hbm [shape: f32[64,64], index: 5, kind: input, shape index: {}]   ;;  %s1023_s6 = inlined_call_operand.vmem [shape: f32[1,64], index: 6, kind: input, shape index: {}]   ;;  %s1024_s7 = inlined_call_operand.hbm [shape: f32[64,64], index: 7, kind: input, shape index: {}]   ;;  %s1025_s8 = inlined_call_operand.vmem [shape: f32[1,64], index: 8, kind: input, shape index: {}]   ;;  %s1026_s9 = inlined_call_operand.hbm [shape: f32[8,64], index: 9, kind: output, shape index: {0}]   ;;  %s1027_s10 = inlined_call_operand.hbm [shape: f32[8,64], index: 10, kind: output, shape index: {1}]  }
   0x1   :  { %17 = vsyncpa [#allocation6], 0 }
   0x2   :  { %18 = vsyncpa [#allocation9], 0 }
   0x3   :  { %19 = vsyncpa [#allocation4], 0 }
   0x4   :  { %20 = vsyncpa [#allocation13], 0  ;;  %s815_s13 = smov [#allocation5]   ;;  %s651_s17 = scalar_lea.hbm %s1018_s1, 512 }
   0x5   :  { %s36_s14 = sshll.u32 %s815_s13, 4  ;;  %p652_p0 = scmp.ne.s32.totalorder %s1018_s1, %s651_s17  ;;  %s37_s14 = int_to_ptr.vmem [resolvable:$true] %s36_s14 }
   0x6   :  { %p655_p1 = scmp.lt.u32.totalorder %s651_s17, %s1018_s1 }
   0x8   :  { %p657_p2 = pnand %p655_p1, %p652_p0 }
   0xa   :  { %660 = shalt.err (!%p657_p2)
}
   0xb   :  { %s661_s22 = scalar_lea.vmem %s37_s14, 512  ;;  %p666_p4 = scmp.lt.s32.totalorder %s37_s14, %s37_s14 }
   0xc   :  { %p662_p3 = scmp.ne.s32.totalorder %s37_s14, %s661_s22  ;;  %p667_p5 = scmp.lt.s32.totalorder %s661_s22, %s661_s22 }
   0xe   :  { %p668_p6 = por %p667_p5, %p666_p4 }
  0x10   :  { %p669_p7 = pnand %p668_p6, %p662_p3 }
  0x12   :  { %672 = shalt.err (!%p669_p7)
}
  0x13   :  { %s816_s23 = smov 128   ;;  %s817_s24 = smov 8  }
  0x14   :  { %42 = dma.hbm_to_vmem [thread:$0]  %s1018_s1, 512, %s37_s14, [#allocation6], %s816_s23, %s816_s23, %s817_s24  }
  0x15   :  { %s818_s27 = smov [#allocation8]   ;;  %s819_s29 = smov [#allocation2]  }
  0x16   :  { %s64_s28 = sshll.u32 %s818_s27, 4  ;;  %s27_s30 = sshll.u32 %s819_s29, 4  ;;  %s65_s28 = int_to_ptr.vmem [resolvable:$true] %s64_s28  ;;  %s28_s30 = int_to_ptr.vmem [resolvable:$true] %s27_s30 }
  0x17   :  { %s673_s13 = scalar_lea.hbm %s1022_s5, 1024 }
  0x18   :  { %p674_p8 = scmp.ne.s32.totalorder %s1022_s5, %s673_s13  ;;  %p677_p9 = scmp.lt.u32.totalorder %s673_s13, %s1022_s5 }
  0x1a   :  { %p679_p10 = pnand %p677_p9, %p674_p8 }
  0x1c   :  { %682 = shalt.err (!%p679_p10)
}
  0x1d   :  { %s683_s1 = scalar_lea.vmem %s65_s28, 1024  ;;  %p688_p12 = scmp.lt.s32.totalorder %s65_s28, %s65_s28 }
  0x1e   :  { %p684_p11 = scmp.ne.s32.totalorder %s65_s28, %s683_s1  ;;  %p689_p13 = scmp.lt.s32.totalorder %s683_s1, %s683_s1 }
  0x20   :  { %p690_p0 = por %p689_p13, %p688_p12 }
  0x22   :  { %p691_p1 = pnand %p690_p0, %p684_p11 }
  0x24   :  { %694 = shalt.err (!%p691_p1)
}
  0x25   :  { %70 = dma.hbm_to_vmem [thread:$0]  %s1022_s5, 1024, %s65_s28, [#allocation9], %s816_s23, %s816_s23, %s817_s24  }
  0x26   :  { %s695_s22 = scalar_lea.hbm %s1017_s0, 128 }
  0x27   :  { %p696_p2 = scmp.ne.s32.totalorder %s1017_s0, %s695_s22  ;;  %p699_p3 = scmp.lt.u32.totalorder %s695_s22, %s1017_s0 }
  0x29   :  { %p701_p4 = pnand %p699_p3, %p696_p2 }
  0x2b   :  { %704 = shalt.err (!%p701_p4)
}
  0x2c   :  { %s705_s11 = scalar_lea.vmem %s28_s30, 128  ;;  %p710_p6 = scmp.lt.s32.totalorder %s28_s30, %s28_s30 }
  0x2d   :  { %p706_p5 = scmp.ne.s32.totalorder %s28_s30, %s705_s11  ;;  %p711_p7 = scmp.lt.s32.totalorder %s705_s11, %s705_s11 }
  0x2f   :  { %p712_p8 = por %p711_p7, %p710_p6 }
  0x31   :  { %p713_p9 = pnand %p712_p8, %p706_p5 }
  0x33   :  { %716 = shalt.err (!%p713_p9)
}
  0x34   :  { %30 = dma.hbm_to_vmem [thread:$0]  %s1017_s0, 128, %s28_s30, [#allocation3]  }
  0x35   :  { %s820_s12 = smov [#allocation7]   ;;  %s821_s15 = smov [#allocation10]  }
  0x36   :  { %s50_s13 = sshll.u32 %s820_s12, 4  ;;  %s78_s16 = sshll.u32 %s821_s15, 4  ;;  %s51_s13 = int_to_ptr.vmem [resolvable:$true] %s50_s13  ;;  %s79_s16 = int_to_ptr.vmem [resolvable:$true] %s78_s16 }
  0x37   :  { %s717_s1 = scalar_lea.hbm %s1020_s3, 1024 }
  0x38   :  { %p718_p10 = scmp.ne.s32.totalorder %s1020_s3, %s717_s1  ;;  %p721_p11 = scmp.lt.u32.totalorder %s717_s1, %s1020_s3 }
  0x3a   :  { %p723_p12 = pnand %p721_p11, %p718_p10 }
  0x3c   :  { %726 = shalt.err (!%p723_p12)
}
  0x3d   :  { %s727_s0 = scalar_lea.vmem %s51_s13, 1024  ;;  %p732_p0 = scmp.lt.s32.totalorder %s51_s13, %s51_s13 }
  0x3e   :  { %p728_p13 = scmp.ne.s32.totalorder %s51_s13, %s727_s0  ;;  %p733_p1 = scmp.lt.s32.totalorder %s727_s0, %s727_s0 }
  0x40   :  { %p734_p2 = por %p733_p1, %p732_p0 }
  0x42   :  { %p735_p3 = pnand %p734_p2, %p728_p13 }
  0x44   :  { %738 = shalt.err (!%p735_p3)
}
  0x45   :  { %56 = dma.hbm_to_vmem [thread:$0]  %s1020_s3, 1024, %s51_s13, [#allocation6], %s816_s23, %s816_s23, %s817_s24  }
  0x46   :  { %s739_s27 = scalar_lea.hbm %s1024_s7, 1024 }
  0x47   :  { %p740_p4 = scmp.ne.s32.totalorder %s1024_s7, %s739_s27  ;;  %p743_p5 = scmp.lt.u32.totalorder %s739_s27, %s1024_s7 }
  0x49   :  { %p745_p6 = pnand %p743_p5, %p740_p4 }
  0x4b   :  { %748 = shalt.err (!%p745_p6)
}
  0x4c   :  { %s749_s12 = scalar_lea.vmem %s79_s16, 1024  ;;  %p754_p8 = scmp.lt.s32.totalorder %s79_s16, %s79_s16 }
  0x4d   :  { %p750_p7 = scmp.ne.s32.totalorder %s79_s16, %s749_s12  ;;  %p755_p9 = scmp.lt.s32.totalorder %s749_s12, %s749_s12 }
  0x4f   :  { %p756_p10 = por %p755_p9, %p754_p8 }
  0x51   :  { %p757_p11 = pnand %p756_p10, %p750_p7 }
  0x53   :  { %760 = shalt.err (!%p757_p11)
}
  0x54   :  { %84 = dma.hbm_to_vmem [thread:$0]  %s1024_s7, 1024, %s79_s16, [#allocation9], %s816_s23, %s816_s23, %s817_s24  }
  0x55   :  { %805 = dma.done.wait [#allocation3], 128  }
  0x56   :  { %806 = vsyncadd [#allocation3], 4294967168 }
  0x57   :  { %807 = dma.done.wait [#allocation6], 1536  }
  0x58   :  { %808 = vsyncadd [#allocation6], 4294965760 }
  0x59   :  { %809 = dma.done.wait [#allocation9], 2048  }
  0x5a   :  { %810 = vsyncadd [#allocation9], 4294965248  ;;  %v822_v0 = vmov 0.0|0.0   ;;  %vm823_vm0 = vmmov 0   ;;  %v824_v1 = vmov 0.0   ;;  %v103_v2 = vld [vmem:[#allocation5] sm:$0xff] }
  0x5b   :  { %597 = vmatprep.subr.bf16.mxu0 %v822_v0  ;;  %537 = vmatprep.mubr.msk.f32.mxu0 %vm823_vm0, %v824_v1  ;;  %v104_v3 = vld [vmem:[#allocation5 + $0x8] sm:$0xff]  ;;  %v105_v4 = vld [vmem:[#allocation5 + $0x10] sm:$0xff]  ;;  %v106_v6 = vld [vmem:[#allocation5 + $0x18] sm:$0xff]  ;;  %vm114_vm1 = vcmask 261120   ;;  %vm206_vm3 = vcmask 523264   ;;  %s825_s1 = smov [#allocation11]  }
  0x5c   :  { %603 = vmatprep.subr.bf16.mxu1 %v822_v0  ;;  %556 = vmatprep.mubr.msk.f32.mxu1 %vm823_vm0, %v824_v1  ;;  %v598_v5 = vpack.c.bf16 %v104_v3, %v103_v2  ;;  %v191_v7 = vld [vmem:[#allocation7] sm:$0xff]  ;;  %v192_v8 = vld [vmem:[#allocation7 + $0x8] sm:$0xff]  ;;  %v193_v9 = vld [vmem:[#allocation7 + $0x10] sm:$0xff]  ;;  %v601_v11 = vpack.c.bf16 %v106_v6, %v105_v4  ;;  %s826_s14 = smov [#allocation12]  }
  0x5d   :  { %v194_v10 = vld [vmem:[#allocation7 + $0x18] sm:$0xff]  ;;  %v604_v12 = vpack.c.bf16 %v192_v8, %v191_v7  ;;  %v195_v14 = vld [vmem:[#allocation7 + $0x20] sm:$0xff]  ;;  %v196_v15 = vld [vmem:[#allocation7 + $0x28] sm:$0xff]  ;;  %s474_s19 = sshll.u32 %s826_s14, 4  ;;  %s475_s19 = int_to_ptr.vmem [resolvable:$true] %s474_s19 }
  0x5e   :  { %599 = vmatpush3.bf16.msra.mxu0 %v598_v5  ;;  %v607_v13 = vpack.c.bf16 %v194_v10, %v193_v9  ;;  %v102_v16 = vld [vmem:[#allocation2] sm:$0xff]  ;;  %v610_v17 = vpack.c.bf16 %v196_v15, %v195_v14  ;;  %v197_v18 = vld [vmem:[#allocation7 + $0x30] sm:$0xff]  ;;  %v283_v21 = vld [vmem:[#allocation8] sm:$0xff] }
  0x5f   :  { %600 = vmatprep.subr.bf16.mxu0 %v822_v0  ;;  %605 = vmatpush3.bf16.msra.mxu1 %v604_v12  ;;  %v198_v19 = vld [vmem:[#allocation7 + $0x38] sm:$0xff]  ;;  %v284_v22 = vld [vmem:[#allocation8 + $0x8] sm:$0xff]  ;;  %v285_v24 = vld [vmem:[#allocation8 + $0x10] sm:$0xff] }
  0x60   :  { %606 = vmatprep.subr.bf16.mxu1 %v822_v0  ;;  %v613_v20 = vpack.c.bf16 %v198_v19, %v197_v18  ;;  %v616_v23 = vpack.c.bf16 %v284_v22, %v283_v21  ;;  %v286_v25 = vld [vmem:[#allocation8 + $0x18] sm:$0xff]  ;;  %v287_v27 = vld [vmem:[#allocation8 + $0x20] sm:$0xff]  ;;  %v288_v28 = vld [vmem:[#allocation8 + $0x28] sm:$0xff] }
  0x61   :  { %v619_v26 = vpack.c.bf16 %v286_v25, %v285_v24  ;;  %v622_v29 = vpack.c.bf16 %v288_v28, %v287_v27  ;;  %v489_v30 = vld [vmem:[%s1019_s2] ss:$0 sm:$0xff]  ;;  %v371_v32 = vld [vmem:[#allocation10] sm:$0xff]  ;;  %v372_v33 = vld [vmem:[#allocation10 + $0x8] sm:$0xff] }
  0x62   :  { %602 = vmatpush3.bf16.msra.mxu0 %v601_v11  ;;  %v628_v37 = vpack.c.bf16 %v372_v33, %v371_v32  ;;  %v373_v38 = vld [vmem:[#allocation10 + $0x10] sm:$0xff]  ;;  %v374_v39 = vld [vmem:[#allocation10 + $0x18] sm:$0xff]  ;;  %v375_v42 = vld [vmem:[#allocation10 + $0x20] sm:$0xff] }
  0x63   :  { %615 = vmatprep.subr.bf16.mxu0 %v822_v0  ;;  %608 = vmatpush3.bf16.msra.mxu1 %v607_v13  ;;  %v631_v41 = vpack.c.bf16 %v374_v39, %v373_v38  ;;  %v376_v43 = vld [vmem:[#allocation10 + $0x28] sm:$0xff]  ;;  %v289_v45 = vld [vmem:[#allocation8 + $0x30] sm:$0xff]  ;;  %v290_v46 = vld [vmem:[#allocation8 + $0x38] sm:$0xff] }
  0x64   :  { %609 = vmatprep.subr.bf16.mxu1 %v822_v0  ;;  %v634_v44 = vpack.c.bf16 %v376_v43, %v375_v42  ;;  %v377_v47 = vld [vmem:[#allocation10 + $0x30] sm:$0xff]  ;;  %v625_v48 = vpack.c.bf16 %v290_v46, %v289_v45  ;;  %v378_v49 = vld [vmem:[#allocation10 + $0x38] sm:$0xff] }
  0x65   :  { %538 = vmatmul.mubr.msk.f32.vlgmr.msra.gmra.mrb[0].mxu0 %vm114_vm1, %v102_v16  ;;  %v637_v50 = vpack.c.bf16 %v378_v49, %v377_v47  ;;  %v491_v51 = vld [vmem:[%s1021_s4] ss:$0 sm:$0xff]  ;;  %s464_s4 = sshll.u32 %s825_s1, 4  ;;  %s465_s4 = int_to_ptr.vmem [resolvable:$true] %s464_s4 }
  0x66   :  { %575 = vmatprep.mubr.msk.f32.mxu0 %vm823_vm0, %v824_v1  ;;  %617 = vmatpush3.bf16.msra.mxu0 %v616_v23  ;;  %v493_v57 = vld [vmem:[%s1023_s6] ss:$0 sm:$0xff]  ;;  %s761_s6 = scalar_lea.vmem %s465_s4, 128  ;;  %p766_p13 = scmp.lt.s32.totalorder %s465_s4, %s465_s4 }
  0x67   :  { %611 = vmatpush3.bf16.msra.mxu1 %v610_v17  ;;  %618 = vmatprep.subr.bf16.mxu0 %v822_v0  ;;  %v495_v58 = vld [vmem:[%s1025_s8] ss:$0 sm:$0xff]  ;;  %p762_p12 = scmp.ne.s32.totalorder %s465_s4, %s761_s6  ;;  %p767_p0 = scmp.lt.s32.totalorder %s761_s6, %s761_s6 }
  0x68   :  { %612 = vmatprep.subr.bf16.mxu1 %v822_v0 }
  0x69   :  { %p768_p1 = por %p767_p0, %p766_p13 }
  0x6a   :  { %620 = vmatpush3.bf16.msra.mxu0 %v619_v26 }
  0x6b   :  { %614 = vmatpush3.bf16.msra.mxu1 %v613_v20  ;;  %621 = vmatprep.subr.bf16.mxu0 %v822_v0  ;;  %p769_p2 = pnand %p768_p1, %p762_p12 }
  0x6c   :  { %627 = vmatprep.subr.bf16.mxu1 %v822_v0 }
  0x6e   :  { %623 = vmatpush3.bf16.msra.mxu0 %v622_v29 }
  0x6f   :  { %624 = vmatprep.subr.bf16.mxu0 %v822_v0 }
  0x72   :  { %626 = vmatpush3.bf16.msra.mxu0 %v625_v48 }
 0x138   :  { %v184_v31 = vpop.f32.mrb[0].mxu0 }
 0x139   :  { %v185_v34 = vadd.f32 %v489_v30, %v184_v31  ;;  %v539_v35 = vpop.f32.mrb[1].mxu0 }
 0x13b   :  { %vm188_vm2 = vcmp.gt.f32.partialorder %v185_v34, 0.0  ;;  %v189_v36 = vmul.f32 0.01, %v185_v34 }
 0x13d   :  { %v190_v40 = vsel %vm188_vm2, %v185_v34, %v189_v36 }
 0x13e   :  { %557 = vmatmul.mubr.msk.f32.vlgmr.msra.gmra.mrb[0].mxu1 %vm206_vm3, %v190_v40 }
 0x13f   :  { %629 = vmatpush3.bf16.msra.mxu1 %v628_v37  ;;  %594 = vmatprep.mubr.msk.f32.mxu1 %vm823_vm0, %v824_v1 }
 0x140   :  { %630 = vmatprep.subr.bf16.mxu1 %v822_v0 }
 0x143   :  { %632 = vmatpush3.bf16.msra.mxu1 %v631_v41 }
 0x144   :  { %633 = vmatprep.subr.bf16.mxu1 %v822_v0 }
 0x147   :  { %635 = vmatpush3.bf16.msra.mxu1 %v634_v44 }
 0x148   :  { %636 = vmatprep.subr.bf16.mxu1 %v822_v0 }
 0x14b   :  { %638 = vmatpush3.bf16.msra.mxu1 %v637_v50 }
 0x211   :  { %v276_v52 = vpop.f32.mrb[0].mxu1 }
 0x212   :  { %v277_v53 = vadd.f32 %v491_v51, %v276_v52  ;;  %v558_v54 = vpop.f32.mrb[1].mxu1 }
 0x214   :  { %vm280_vm4 = vcmp.gt.f32.partialorder %v277_v53, 0.0  ;;  %v281_v55 = vmul.f32 0.01, %v277_v53 }
 0x216   :  { %v282_v56 = vsel %vm280_vm4, %v277_v53, %v281_v55 }
 0x217   :  { %576 = vmatmul.mubr.msk.f32.vlgmr.msra.gmra.mrb[2].mxu0 %vm206_vm3, %v282_v56  ;;  %595 = vmatmul.mubr.msk.f32.vlgmr.msra.gmra.mrb[2].mxu1 %vm206_vm3, %v282_v56 }
 0x2ea   :  { %v367_v59 = vpop.f32.mrb[2].mxu0  ;;  %v452_v60 = vpop.f32.mrb[2].mxu1 }
 0x2eb   :  { %v368_v61 = vadd.f32 %v493_v57, %v367_v59  ;;  %v453_v62 = vadd.f32 %v495_v58, %v452_v60  ;;  %v577_v63 = vpop.f32.mrb[3].mxu0  ;;  %v596_v0 = vpop.f32.mrb[3].mxu1 }
 0x2ed   :  { %456 = vst.msk [vmem:[#allocation11] sm:$0xff] %vm206_vm3, %v368_v61  ;;  %457 = vst.msk [vmem:[#allocation12] sm:$0xff] %vm206_vm3, %v453_v62 }
 0x2ee   :  { %772 = shalt.err (!%p769_p2)
}
 0x2ef   :  { %s773_s21 = scalar_lea.hbm %s1026_s9, 128 }
 0x2f0   :  { %p774_p3 = scmp.ne.s32.totalorder %s1026_s9, %s773_s21  ;;  %p777_p4 = scmp.lt.u32.totalorder %s773_s21, %s1026_s9 }
 0x2f2   :  { %p779_p5 = pnand %p777_p4, %p774_p3 }
 0x2f4   :  { %782 = shalt.err (!%p779_p5)
}
 0x2f5   :  { %467 = dma.vmem_to_hbm [thread:$0]  %s465_s4, 128, %s1026_s9, [#allocation4]  }
 0x2f6   :  { %s783_s29 = scalar_lea.vmem %s475_s19, 128  ;;  %p788_p7 = scmp.lt.s32.totalorder %s475_s19, %s475_s19 }
 0x2f7   :  { %p784_p6 = scmp.ne.s32.totalorder %s475_s19, %s783_s29  ;;  %p789_p8 = scmp.lt.s32.totalorder %s783_s29, %s783_s29 }
 0x2f9   :  { %p790_p9 = por %p789_p8, %p788_p7 }
 0x2fb   :  { %p791_p10 = pnand %p790_p9, %p784_p6 }
 0x2fd   :  { %794 = shalt.err (!%p791_p10)
}
 0x2fe   :  { %s795_s28 = scalar_lea.hbm %s1027_s10, 128 }
 0x2ff   :  { %p796_p11 = scmp.ne.s32.totalorder %s1027_s10, %s795_s28  ;;  %p799_p12 = scmp.lt.u32.totalorder %s795_s28, %s1027_s10 }
 0x301   :  { %p801_p13 = pnand %p799_p12, %p796_p11 }
 0x303   :  { %804 = shalt.err (!%p801_p13)
}
 0x304   :  { %477 = dma.vmem_to_hbm [thread:$0]  %s475_s19, 128, %s1027_s10, [#allocation13]  }
 0x305   :  { %811 = dma.done.wait [#allocation4], 128  }
 0x306   :  { %812 = vsyncadd [#allocation4], 4294967168 }
 0x307   :  { %813 = dma.done.wait [#allocation13], 128  }
 0x308   :  { %814 = vsyncadd [#allocation13], 4294967168 }
 0x309   :  { %484 = vsyncpa [#allocation3], 1 }
 0x30a   :  { %485 = vsyncpa [#allocation6], 1 }
 0x30b   :  { %486 = vsyncpa [#allocation9], 1 }
 0x30c   :  { %487 = vsyncpa [#allocation4], 1 }
 0x30d   :  { %488 = vsyncpa [#allocation13], 1 }

</bundles_post_ra>
